<compile_context>
chip_gen: v5e
topology: v5e:2x2
jax: 0.10.0
libtpu: 0.0.40
codegen_flags: <defaults>
</compile_context>

<pallas_src>
import math

import jax
import jax.numpy as jnp
from jax.experimental import pallas as pl
from jax.experimental.pallas import tpu as pltpu

NUM_LAYERS = 7  # 6 hidden Linear+ReLU + 1 final Linear
LANE = 128
SUBLANE = 8


def _round_up(x, m):
    return ((x + m - 1) // m) * m


def _mlp_kernel(x_ref, *refs):
    # refs = (w1, b1, w2, b2, ..., w7, b7, out_ref)
    out_ref = refs[-1]
    param_refs = refs[:-1]

    h = x_ref[...]  # (TB, in_pad)
    for layer in range(NUM_LAYERS):
        w_ref = param_refs[2 * layer]
        b_ref = param_refs[2 * layer + 1]
        # MXU matmul with f32 accumulation; bias-add / ReLU stay in f32 on the VPU.
        acc = jnp.dot(
            h.astype(w_ref.dtype), w_ref[...], preferred_element_type=jnp.float32
        )
        acc = acc + b_ref[...].astype(jnp.float32)
        if layer < NUM_LAYERS - 1:
            acc = jnp.maximum(acc, 0.0)  # ReLU
        h = acc
    out_ref[...] = h.astype(out_ref.dtype)


def bp_network_basic_forward(x, params, *, compute_dtype=jnp.float32, tb_max=512):
    """x: [batch, input_dim] f32; params: list of (W[in, out], b[1, out])."""
    batch, input_dim = x.shape
    num_class = params[-1][0].shape[1]

    # ---- Lane-pad every feature dim to a multiple of 128 (lane-dense IO, full MXU).
    in_pad = _round_up(input_dim, LANE)
    dims = [in_pad]
    padded_params = []
    for (w, b) in params:
        fan_in, fan_out = w.shape
        out_pad = _round_up(fan_out, LANE)
        w_p = (
            jnp.zeros((dims[-1], out_pad), compute_dtype)
            .at[:fan_in, :fan_out]
            .set(w.astype(compute_dtype))
        )
        b_p = (
            jnp.zeros((1, out_pad), jnp.float32)
            .at[:, :fan_out]
            .set(b.astype(jnp.float32))
        )
        padded_params += [w_p, b_p]
        dims.append(out_pad)
    cls_pad = dims[-1]

    # ---- Batch tile: multiple of 8 sublanes; large enough to amortize per-step cost.
    tb = min(tb_max, _round_up(batch, SUBLANE))
    batch_pad = _round_up(batch, tb)
    x_p = jnp.zeros((batch_pad, in_pad), x.dtype).at[:batch, :input_dim].set(x)
    nb = batch_pad // tb

    # ---- VMEM budget (explicit, with headroom; clamped for v7x's 64 MiB VMEM).
    w_bytes = sum(int(p.size) * p.dtype.itemsize for p in padded_params)
    io_bytes = 2 * tb * in_pad * x.dtype.itemsize + 2 * tb * cls_pad * x.dtype.itemsize
    act_bytes = 2 * tb * max(dims) * 4  # live f32 activation + spill slack
    vmem_est = 2 * w_bytes + io_bytes + act_bytes
    vmem_limit = int(min(max(2 * vmem_est, 32 * 1024 * 1024), 64 * 1024 * 1024))
    # NOTE: weights are block-index-invariant so Pallas does not re-DMA them per
    # grid step; for very large hidden_dim consider pipeline_mode=pl.Buffered(1)
    # on the weight specs to drop their second pipeline buffer.

    flops = 2 * batch_pad * sum(dims[i] * dims[i + 1] for i in range(NUM_LAYERS))
    bytes_accessed = (
        int(x_p.size) * x_p.dtype.itemsize
        + w_bytes
        + batch_pad * cls_pad * x.dtype.itemsize
    )
    cost = pl.CostEstimate(
        flops=flops, transcendentals=0, bytes_accessed=bytes_accessed
    )

    in_specs = [pl.BlockSpec((tb, in_pad), lambda i: (i, 0))]
    for p in padded_params:
        in_specs.append(pl.BlockSpec(p.shape, lambda i: (0, 0)))  # VMEM-resident

    out_padded = pl.pallas_call(
        _mlp_kernel,
        out_shape=jax.ShapeDtypeStruct((batch_pad, cls_pad), x.dtype),
        grid=(nb,),
        in_specs=in_specs,
        out_specs=pl.BlockSpec((tb, cls_pad), lambda i: (i, 0)),
        compiler_params=pltpu.CompilerParams(
            dimension_semantics=("parallel",),
            vmem_limit_bytes=vmem_limit,
        ),
        cost_estimate=cost,
    )(x_p, *padded_params)

    return out_padded[:batch, :num_class]


def init_params(key, input_dim, hidden_dim, num_class):
    """Deterministic init mimicking PyTorch nn.Linear default (uniform +/-1/sqrt(fan_in))."""
    dims = [input_dim] + [hidden_dim] * 6 + [num_class]
    params = []
    for i in range(NUM_LAYERS):
        fan_in, fan_out = dims[i], dims[i + 1]
        key, kw, kb = jax.random.split(key, 3)
        bound = 1.0 / math.sqrt(fan_in)
        # Stored as [in, out] (transpose of PyTorch's [out, in]) for x @ W.
        w = jax.random.uniform(kw, (fan_in, fan_out), jnp.float32, -bound, bound)
        b = jax.random.uniform(kb, (1, fan_out), jnp.float32, -bound, bound)
        params.append((w, b))
    return params


def reference_forward(x, params):
    h = x
    for i, (w, b) in enumerate(params):
        h = h @ w + b
        if i < NUM_LAYERS - 1:
            h = jnp.maximum(h, 0.0)
    return h


if __name__ == "__main__":
    batch, input_dim, hidden_dim, num_class = 8, 32, 32, 10

    key = jax.random.PRNGKey(0)
    key, kx = jax.random.split(key)
    x = jax.random.normal(kx, (batch, input_dim), jnp.float32)
    params = init_params(key, input_dim, hidden_dim, num_class)

    ref = reference_forward(x, params)

    # f32 path (exact match vs reference).
    out = bp_network_basic_forward(x, params, compute_dtype=jnp.float32)
    out = jax.block_until_ready(out)
    assert out.shape == (batch, num_class)
    assert jnp.allclose(out, ref, atol=1e-5, rtol=1e-5), "f32 mismatch vs reference"

    # bf16 weights/activations with f32 accumulation (v6e/v7x fast path).
    out_bf16 = bp_network_basic_forward(x, params, compute_dtype=jnp.bfloat16)
    out_bf16 = jax.block_until_ready(out_bf16)
    assert out_bf16.shape == (batch, num_class)
    assert jnp.allclose(out_bf16, ref, atol=1e-1, rtol=1e-1), "bf16 mismatch vs reference"

    print("KERNEL_OK")
</pallas_src>

<mosaic_0001>
module attributes {stable_mosaic.version = 11 : i64} {
  func.func @_mlp_kernel(%arg0: i32, %arg1: memref<8x128xf32, #tpu.memory_space<vmem>>, %arg2: memref<128x128xf32, #tpu.memory_space<vmem>>, %arg3: memref<1x128xf32, #tpu.memory_space<vmem>>, %arg4: memref<128x128xf32, #tpu.memory_space<vmem>>, %arg5: memref<1x128xf32, #tpu.memory_space<vmem>>, %arg6: memref<128x128xf32, #tpu.memory_space<vmem>>, %arg7: memref<1x128xf32, #tpu.memory_space<vmem>>, %arg8: memref<128x128xf32, #tpu.memory_space<vmem>>, %arg9: memref<1x128xf32, #tpu.memory_space<vmem>>, %arg10: memref<128x128xf32, #tpu.memory_space<vmem>>, %arg11: memref<1x128xf32, #tpu.memory_space<vmem>>, %arg12: memref<128x128xf32, #tpu.memory_space<vmem>>, %arg13: memref<1x128xf32, #tpu.memory_space<vmem>>, %arg14: memref<128x128xf32, #tpu.memory_space<vmem>>, %arg15: memref<1x128xf32, #tpu.memory_space<vmem>>, %arg16: memref<8x128xf32, #tpu.memory_space<vmem>>) attributes {dimension_semantics = [#tpu.dimension_semantics<parallel>], iteration_bounds = array<i64: 1>, scalar_prefetch = 0 : i64, scratch_operands = 0 : i64, tpu.core_type = #tpu.core_type<tc>, window_params = [{transform_indices = @transform_0, window_bounds = array<i64: 8, 128>}, {pipeline_mode = #tpu.pipeline_mode<synchronous>, transform_indices = @transform_1, window_bounds = array<i64: 128, 128>}, {pipeline_mode = #tpu.pipeline_mode<synchronous>, transform_indices = @transform_2, window_bounds = array<i64: 1, 128>}, {pipeline_mode = #tpu.pipeline_mode<synchronous>, transform_indices = @transform_3, window_bounds = array<i64: 128, 128>}, {pipeline_mode = #tpu.pipeline_mode<synchronous>, transform_indices = @transform_4, window_bounds = array<i64: 1, 128>}, {pipeline_mode = #tpu.pipeline_mode<synchronous>, transform_indices = @transform_5, window_bounds = array<i64: 128, 128>}, {pipeline_mode = #tpu.pipeline_mode<synchronous>, transform_indices = @transform_6, window_bounds = array<i64: 1, 128>}, {pipeline_mode = #tpu.pipeline_mode<synchronous>, transform_indices = @transform_7, window_bounds = array<i64: 128, 128>}, {pipeline_mode = #tpu.pipeline_mode<synchronous>, transform_indices = @transform_8, window_bounds = array<i64: 1, 128>}, {pipeline_mode = #tpu.pipeline_mode<synchronous>, transform_indices = @transform_9, window_bounds = array<i64: 128, 128>}, {pipeline_mode = #tpu.pipeline_mode<synchronous>, transform_indices = @transform_10, window_bounds = array<i64: 1, 128>}, {pipeline_mode = #tpu.pipeline_mode<synchronous>, transform_indices = @transform_11, window_bounds = array<i64: 128, 128>}, {pipeline_mode = #tpu.pipeline_mode<synchronous>, transform_indices = @transform_12, window_bounds = array<i64: 1, 128>}, {pipeline_mode = #tpu.pipeline_mode<synchronous>, transform_indices = @transform_13, window_bounds = array<i64: 128, 128>}, {pipeline_mode = #tpu.pipeline_mode<synchronous>, transform_indices = @transform_14, window_bounds = array<i64: 1, 128>}, {transform_indices = @transform_15, window_bounds = array<i64: 8, 128>}]} {
    %c0 = arith.constant 0 : index
    %c0_0 = arith.constant 0 : index
    %0 = vector.load %arg1[%c0, %c0_0] : memref<8x128xf32, #tpu.memory_space<vmem>>, vector<8x128xf32>
    %c0_1 = arith.constant 0 : index
    %c0_2 = arith.constant 0 : index
    %1 = vector.load %arg2[%c0_1, %c0_2] : memref<128x128xf32, #tpu.memory_space<vmem>>, vector<128x128xf32>
    %cst = arith.constant dense<0.000000e+00> : vector<8x128xf32>
    %2 = tpu.matmul %0, %1, %cst {dimension_numbers = #tpu.dot_dimension_numbers<[1], [0], [0], [1], [0, 0, 1, 1], [], []>} : vector<8x128xf32>, vector<128x128xf32>, vector<8x128xf32> -> vector<8x128xf32>
    %c0_3 = arith.constant 0 : index
    %c0_4 = arith.constant 0 : index
    %3 = vector.load %arg3[%c0_3, %c0_4] : memref<1x128xf32, #tpu.memory_space<vmem>>, vector<1x128xf32>
    %4 = vector.broadcast %3 : vector<1x128xf32> to vector<8x128xf32>
    %5 = arith.addf %2, %4 : vector<8x128xf32>
    %cst_5 = arith.constant 0.000000e+00 : f32
    %6 = vector.broadcast %cst_5 : f32 to vector<8x128xf32>
    %7 = arith.maximumf %5, %6 : vector<8x128xf32>
    %c0_6 = arith.constant 0 : index
    %c0_7 = arith.constant 0 : index
    %8 = vector.load %arg4[%c0_6, %c0_7] : memref<128x128xf32, #tpu.memory_space<vmem>>, vector<128x128xf32>
    %cst_8 = arith.constant dense<0.000000e+00> : vector<8x128xf32>
    %9 = tpu.matmul %7, %8, %cst_8 {dimension_numbers = #tpu.dot_dimension_numbers<[1], [0], [0], [1], [0, 0, 1, 1], [], []>} : vector<8x128xf32>, vector<128x128xf32>, vector<8x128xf32> -> vector<8x128xf32>
    %c0_9 = arith.constant 0 : index
    %c0_10 = arith.constant 0 : index
    %10 = vector.load %arg5[%c0_9, %c0_10] : memref<1x128xf32, #tpu.memory_space<vmem>>, vector<1x128xf32>
    %11 = vector.broadcast %10 : vector<1x128xf32> to vector<8x128xf32>
    %12 = arith.addf %9, %11 : vector<8x128xf32>
    %cst_11 = arith.constant 0.000000e+00 : f32
    %13 = vector.broadcast %cst_11 : f32 to vector<8x128xf32>
    %14 = arith.maximumf %12, %13 : vector<8x128xf32>
    %c0_12 = arith.constant 0 : index
    %c0_13 = arith.constant 0 : index
    %15 = vector.load %arg6[%c0_12, %c0_13] : memref<128x128xf32, #tpu.memory_space<vmem>>, vector<128x128xf32>
    %cst_14 = arith.constant dense<0.000000e+00> : vector<8x128xf32>
    %16 = tpu.matmul %14, %15, %cst_14 {dimension_numbers = #tpu.dot_dimension_numbers<[1], [0], [0], [1], [0, 0, 1, 1], [], []>} : vector<8x128xf32>, vector<128x128xf32>, vector<8x128xf32> -> vector<8x128xf32>
    %c0_15 = arith.constant 0 : index
    %c0_16 = arith.constant 0 : index
    %17 = vector.load %arg7[%c0_15, %c0_16] : memref<1x128xf32, #tpu.memory_space<vmem>>, vector<1x128xf32>
    %18 = vector.broadcast %17 : vector<1x128xf32> to vector<8x128xf32>
    %19 = arith.addf %16, %18 : vector<8x128xf32>
    %cst_17 = arith.constant 0.000000e+00 : f32
    %20 = vector.broadcast %cst_17 : f32 to vector<8x128xf32>
    %21 = arith.maximumf %19, %20 : vector<8x128xf32>
    %c0_18 = arith.constant 0 : index
    %c0_19 = arith.constant 0 : index
    %22 = vector.load %arg8[%c0_18, %c0_19] : memref<128x128xf32, #tpu.memory_space<vmem>>, vector<128x128xf32>
    %cst_20 = arith.constant dense<0.000000e+00> : vector<8x128xf32>
    %23 = tpu.matmul %21, %22, %cst_20 {dimension_numbers = #tpu.dot_dimension_numbers<[1], [0], [0], [1], [0, 0, 1, 1], [], []>} : vector<8x128xf32>, vector<128x128xf32>, vector<8x128xf32> -> vector<8x128xf32>
    %c0_21 = arith.constant 0 : index
    %c0_22 = arith.constant 0 : index
    %24 = vector.load %arg9[%c0_21, %c0_22] : memref<1x128xf32, #tpu.memory_space<vmem>>, vector<1x128xf32>
    %25 = vector.broadcast %24 : vector<1x128xf32> to vector<8x128xf32>
    %26 = arith.addf %23, %25 : vector<8x128xf32>
    %cst_23 = arith.constant 0.000000e+00 : f32
    %27 = vector.broadcast %cst_23 : f32 to vector<8x128xf32>
    %28 = arith.maximumf %26, %27 : vector<8x128xf32>
    %c0_24 = arith.constant 0 : index
    %c0_25 = arith.constant 0 : index
    %29 = vector.load %arg10[%c0_24, %c0_25] : memref<128x128xf32, #tpu.memory_space<vmem>>, vector<128x128xf32>
    %cst_26 = arith.constant dense<0.000000e+00> : vector<8x128xf32>
    %30 = tpu.matmul %28, %29, %cst_26 {dimension_numbers = #tpu.dot_dimension_numbers<[1], [0], [0], [1], [0, 0, 1, 1], [], []>} : vector<8x128xf32>, vector<128x128xf32>, vector<8x128xf32> -> vector<8x128xf32>
    %c0_27 = arith.constant 0 : index
    %c0_28 = arith.constant 0 : index
    %31 = vector.load %arg11[%c0_27, %c0_28] : memref<1x128xf32, #tpu.memory_space<vmem>>, vector<1x128xf32>
    %32 = vector.broadcast %31 : vector<1x128xf32> to vector<8x128xf32>
    %33 = arith.addf %30, %32 : vector<8x128xf32>
    %cst_29 = arith.constant 0.000000e+00 : f32
    %34 = vector.broadcast %cst_29 : f32 to vector<8x128xf32>
    %35 = arith.maximumf %33, %34 : vector<8x128xf32>
    %c0_30 = arith.constant 0 : index
    %c0_31 = arith.constant 0 : index
    %36 = vector.load %arg12[%c0_30, %c0_31] : memref<128x128xf32, #tpu.memory_space<vmem>>, vector<128x128xf32>
    %cst_32 = arith.constant dense<0.000000e+00> : vector<8x128xf32>
    %37 = tpu.matmul %35, %36, %cst_32 {dimension_numbers = #tpu.dot_dimension_numbers<[1], [0], [0], [1], [0, 0, 1, 1], [], []>} : vector<8x128xf32>, vector<128x128xf32>, vector<8x128xf32> -> vector<8x128xf32>
    %c0_33 = arith.constant 0 : index
    %c0_34 = arith.constant 0 : index
    %38 = vector.load %arg13[%c0_33, %c0_34] : memref<1x128xf32, #tpu.memory_space<vmem>>, vector<1x128xf32>
    %39 = vector.broadcast %38 : vector<1x128xf32> to vector<8x128xf32>
    %40 = arith.addf %37, %39 : vector<8x128xf32>
    %cst_35 = arith.constant 0.000000e+00 : f32
    %41 = vector.broadcast %cst_35 : f32 to vector<8x128xf32>
    %42 = arith.maximumf %40, %41 : vector<8x128xf32>
    %c0_36 = arith.constant 0 : index
    %c0_37 = arith.constant 0 : index
    %43 = vector.load %arg14[%c0_36, %c0_37] : memref<128x128xf32, #tpu.memory_space<vmem>>, vector<128x128xf32>
    %cst_38 = arith.constant dense<0.000000e+00> : vector<8x128xf32>
    %44 = tpu.matmul %42, %43, %cst_38 {dimension_numbers = #tpu.dot_dimension_numbers<[1], [0], [0], [1], [0, 0, 1, 1], [], []>} : vector<8x128xf32>, vector<128x128xf32>, vector<8x128xf32> -> vector<8x128xf32>
    %c0_39 = arith.constant 0 : index
    %c0_40 = arith.constant 0 : index
    %45 = vector.load %arg15[%c0_39, %c0_40] : memref<1x128xf32, #tpu.memory_space<vmem>>, vector<1x128xf32>
    %46 = vector.broadcast %45 : vector<1x128xf32> to vector<8x128xf32>
    %47 = arith.addf %44, %46 : vector<8x128xf32>
    %c0_41 = arith.constant 0 : index
    %c0_42 = arith.constant 0 : index
    %48 = vector.load %arg16[%c0_41, %c0_42] : memref<8x128xf32, #tpu.memory_space<vmem>>, vector<8x128xf32>
    tpu.vector_store %arg16[%c0_41, %c0_42], %47 {strides = array<i32>} : memref<8x128xf32, #tpu.memory_space<vmem>>, vector<8x128xf32>,
    return
  }
  func.func @transform_0(%arg0: i32) -> (i32, i32) {
    %c0_i32 = arith.constant 0 : i32
    %c0_i32_0 = arith.constant 0 : i32
    return %arg0, %c0_i32 : i32, i32
  }
  func.func @transform_1(%arg0: i32) -> (i32, i32) {
    %c0_i32 = arith.constant 0 : i32
    %c0_i32_0 = arith.constant 0 : i32
    %c0_i32_1 = arith.constant 0 : i32
    return %c0_i32, %c0_i32_0 : i32, i32
  }
  func.func @transform_2(%arg0: i32) -> (i32, i32) {
    %c0_i32 = arith.constant 0 : i32
    %c0_i32_0 = arith.constant 0 : i32
    %c0_i32_1 = arith.constant 0 : i32
    return %c0_i32, %c0_i32_0 : i32, i32
  }
  func.func @transform_3(%arg0: i32) -> (i32, i32) {
    %c0_i32 = arith.constant 0 : i32
    %c0_i32_0 = arith.constant 0 : i32
    %c0_i32_1 = arith.constant 0 : i32
    return %c0_i32, %c0_i32_0 : i32, i32
  }
  func.func @transform_4(%arg0: i32) -> (i32, i32) {
    %c0_i32 = arith.constant 0 : i32
    %c0_i32_0 = arith.constant 0 : i32
    %c0_i32_1 = arith.constant 0 : i32
    return %c0_i32, %c0_i32_0 : i32, i32
  }
  func.func @transform_5(%arg0: i32) -> (i32, i32) {
    %c0_i32 = arith.constant 0 : i32
    %c0_i32_0 = arith.constant 0 : i32
    %c0_i32_1 = arith.constant 0 : i32
    return %c0_i32, %c0_i32_0 : i32, i32
  }
  func.func @transform_6(%arg0: i32) -> (i32, i32) {
    %c0_i32 = arith.constant 0 : i32
    %c0_i32_0 = arith.constant 0 : i32
    %c0_i32_1 = arith.constant 0 : i32
    return %c0_i32, %c0_i32_0 : i32, i32
  }
  func.func @transform_7(%arg0: i32) -> (i32, i32) {
    %c0_i32 = arith.constant 0 : i32
    %c0_i32_0 = arith.constant 0 : i32
    %c0_i32_1 = arith.constant 0 : i32
    return %c0_i32, %c0_i32_0 : i32, i32
  }
  func.func @transform_8(%arg0: i32) -> (i32, i32) {
    %c0_i32 = arith.constant 0 : i32
    %c0_i32_0 = arith.constant 0 : i32
    %c0_i32_1 = arith.constant 0 : i32
    return %c0_i32, %c0_i32_0 : i32, i32
  }
  func.func @transform_9(%arg0: i32) -> (i32, i32) {
    %c0_i32 = arith.constant 0 : i32
    %c0_i32_0 = arith.constant 0 : i32
    %c0_i32_1 = arith.constant 0 : i32
    return %c0_i32, %c0_i32_0 : i32, i32
  }
  func.func @transform_10(%arg0: i32) -> (i32, i32) {
    %c0_i32 = arith.constant 0 : i32
    %c0_i32_0 = arith.constant 0 : i32
    %c0_i32_1 = arith.constant 0 : i32
    return %c0_i32, %c0_i32_0 : i32, i32
  }
  func.func @transform_11(%arg0: i32) -> (i32, i32) {
    %c0_i32 = arith.constant 0 : i32
    %c0_i32_0 = arith.constant 0 : i32
    %c0_i32_1 = arith.constant 0 : i32
    return %c0_i32, %c0_i32_0 : i32, i32
  }
  func.func @transform_12(%arg0: i32) -> (i32, i32) {
    %c0_i32 = arith.constant 0 : i32
    %c0_i32_0 = arith.constant 0 : i32
    %c0_i32_1 = arith.constant 0 : i32
    return %c0_i32, %c0_i32_0 : i32, i32
  }
  func.func @transform_13(%arg0: i32) -> (i32, i32) {
    %c0_i32 = arith.constant 0 : i32
    %c0_i32_0 = arith.constant 0 : i32
    %c0_i32_1 = arith.constant 0 : i32
    return %c0_i32, %c0_i32_0 : i32, i32
  }
  func.func @transform_14(%arg0: i32) -> (i32, i32) {
    %c0_i32 = arith.constant 0 : i32
    %c0_i32_0 = arith.constant 0 : i32
    %c0_i32_1 = arith.constant 0 : i32
    return %c0_i32, %c0_i32_0 : i32, i32
  }
  func.func @transform_15(%arg0: i32) -> (i32, i32) {
    %c0_i32 = arith.constant 0 : i32
    %c0_i32_0 = arith.constant 0 : i32
    return %arg0, %c0_i32 : i32, i32
  }
}

</mosaic_0001>

<bundles_post_ra>
// kernel: tpu_custom_call.1
= control target key start
LH: loop header
LB: loop body
LE: loop exit
PB: predicated region body
PF: predicated region fallthrough
CT: control target
= control target key end

     0   :  { %20 = vsyncpa [#allocation3], 0  ;;  %s889_s0 = inlined_call_operand.hbm [shape: f32[8,128], index: 0, kind: input, shape index: {}]   ;;  %s890_s1 = inlined_call_operand.hbm [shape: f32[128,128], index: 1, kind: input, shape index: {}]   ;;  %s891_s2 = inlined_call_operand.vmem [shape: f32[1,128], index: 2, kind: input, shape index: {}]   ;;  %s892_s3 = inlined_call_operand.hbm [shape: f32[128,128], index: 3, kind: input, shape index: {}]   ;;  %s893_s4 = inlined_call_operand.vmem [shape: f32[1,128], index: 4, kind: input, shape index: {}]   ;;  %s894_s5 = inlined_call_operand.hbm [shape: f32[128,128], index: 5, kind: input, shape index: {}]   ;;  %s895_s6 = inlined_call_operand.vmem [shape: f32[1,128], index: 6, kind: input, shape index: {}]   ;;  %s896_s7 = inlined_call_operand.hbm [shape: f32[128,128], index: 7, kind: input, shape index: {}]   ;;  %s897_s8 = inlined_call_operand.vmem [shape: f32[1,128], index: 8, kind: input, shape index: {}]   ;;  %s898_s9 = inlined_call_operand.hbm [shape: f32[128,128], index: 9, kind: input, shape index: {}]   ;;  %s899_s10 = inlined_call_operand.vmem [shape: f32[1,128], index: 10, kind: input, shape index: {}]   ;;  %s900_s11 = inlined_call_operand.hbm [shape: f32[128,128], index: 11, kind: input, shape index: {}]   ;;  %s901_s12 = inlined_call_operand.vmem [shape: f32[1,128], index: 12, kind: input, shape index: {}]   ;;  %s902_s13 = inlined_call_operand.hbm [shape: f32[128,128], index: 13, kind: input, shape index: {}]   ;;  %s903_s14 = inlined_call_operand.vmem [shape: f32[1,128], index: 14, kind: input, shape index: {}]   ;;  %s904_s15 = inlined_call_operand.hbm [shape: f32[8,128], index: 15, kind: output, shape index: {}]  }
   0x1   :  { %21 = vsyncpa [#allocation6], 0 }
   0x2   :  { %22 = vsyncpa [#allocation9], 0 }
   0x3   :  { %23 = vsyncpa [#allocation12], 0 }
   0x4   :  { %24 = vsyncpa [#allocation15], 0  ;;  %s41_s20 = sshll.u32 %s890_s1, 4  ;;  %s42_s20 = int_to_ptr.hbm [resolvable:$true] %s41_s20 }
   0x5   :  { %25 = vsyncpa [#allocation4], 0  ;;  %s729_s21 = smov [#allocation5]   ;;  %s71_s25 = sshll.u32 %s894_s5, 4  ;;  %s72_s25 = int_to_ptr.hbm [resolvable:$true] %s71_s25 }
   0x6   :  { %s43_s22 = sshll.u32 %s729_s21, 4  ;;  %s730_s26 = smov 128   ;;  %s44_s22 = int_to_ptr.vmem [resolvable:$true] %s43_s22 }
   0x7   :  { %s731_s27 = smov 8   ;;  %s732_s28 = smov [#allocation8]  }
   0x8   :  { %49 = dma.hbm_to_vmem [thread:$0]  %s42_s20, 2048, %s44_s22, [#allocation6], %s730_s26, %s730_s26, %s731_s27  }
   0x9   :  { %s73_s29 = sshll.u32 %s732_s28, 4  ;;  %s101_s16 = sshll.u32 %s898_s9, 4  ;;  %s74_s29 = int_to_ptr.vmem [resolvable:$true] %s73_s29  ;;  %s102_s16 = int_to_ptr.hbm [resolvable:$true] %s101_s16 }
   0xa   :  { %79 = dma.hbm_to_vmem [thread:$0]  %s72_s25, 2048, %s74_s29, [#allocation9], %s730_s26, %s730_s26, %s731_s27  }
   0xb   :  { %s31_s18 = sshll.u32 %s889_s0, 4  ;;  %s733_s19 = smov [#allocation11]   ;;  %s32_s18 = int_to_ptr.hbm [resolvable:$true] %s31_s18 }
   0xc   :  { %s103_s21 = sshll.u32 %s733_s19, 4  ;;  %s734_s20 = smov [#allocation2]   ;;  %s104_s21 = int_to_ptr.vmem [resolvable:$true] %s103_s21 }
   0xd   :  { %109 = dma.hbm_to_vmem [thread:$0]  %s102_s16, 2048, %s104_s21, [#allocation12], %s730_s26, %s730_s26, %s731_s27  }
   0xe   :  { %s33_s9 = sshll.u32 %s734_s20, 4  ;;  %s56_s24 = sshll.u32 %s892_s3, 4  ;;  %s34_s9 = int_to_ptr.vmem [resolvable:$true] %s33_s9  ;;  %s57_s24 = int_to_ptr.hbm [resolvable:$true] %s56_s24 }
   0xf   :  { %36 = dma.hbm_to_vmem [thread:$0]  %s32_s18, 128, %s34_s9, [#allocation3]  }
  0x10   :  { %s86_s0 = sshll.u32 %s896_s7, 4  ;;  %s735_s29 = smov [#allocation7]   ;;  %s87_s0 = int_to_ptr.hbm [resolvable:$true] %s86_s0 }
  0x11   :  { %s58_s30 = sshll.u32 %s735_s29, 4  ;;  %s736_s1 = smov [#allocation10]   ;;  %s59_s30 = int_to_ptr.vmem [resolvable:$true] %s58_s30 }
  0x12   :  { %64 = dma.hbm_to_vmem [thread:$0]  %s57_s24, 2048, %s59_s30, [#allocation6], %s730_s26, %s730_s26, %s731_s27  }
  0x13   :  { %s88_s16 = sshll.u32 %s736_s1, 4  ;;  %s116_s3 = sshll.u32 %s900_s11, 4  ;;  %s89_s16 = int_to_ptr.vmem [resolvable:$true] %s88_s16  ;;  %s117_s3 = int_to_ptr.hbm [resolvable:$true] %s116_s3 }
  0x14   :  { %94 = dma.hbm_to_vmem [thread:$0]  %s87_s0, 2048, %s89_s16, [#allocation9], %s730_s26, %s730_s26, %s731_s27  }
  0x15   :  { %s131_s19 = sshll.u32 %s902_s13, 4  ;;  %s737_s21 = smov [#allocation13]   ;;  %s132_s19 = int_to_ptr.hbm [resolvable:$true] %s131_s19 }
  0x16   :  { %s118_s20 = sshll.u32 %s737_s21, 4  ;;  %s738_s9 = smov [#allocation14]   ;;  %s119_s20 = int_to_ptr.vmem [resolvable:$true] %s118_s20 }
  0x17   :  { %124 = dma.hbm_to_vmem [thread:$0]  %s117_s3, 2048, %s119_s20, [#allocation12], %s730_s26, %s730_s26, %s731_s27  }
  0x18   :  { %s133_s11 = sshll.u32 %s738_s9, 4  ;;  %s134_s11 = int_to_ptr.vmem [resolvable:$true] %s133_s11 }
  0x19   :  { %139 = dma.hbm_to_vmem [thread:$0]  %s132_s19, 2048, %s134_s11, [#allocation15], %s730_s26, %s730_s26, %s731_s27  }
  0x1a   :  { %717 = dma.done.wait [#allocation3], 128  }
  0x1b   :  { %718 = vsyncadd [#allocation3], 4294967168 }
  0x1c   :  { %719 = dma.done.wait [#allocation6], 4096  }
  0x1d   :  { %720 = vsyncadd [#allocation6], 4294963200 }
  0x1e   :  { %721 = dma.done.wait [#allocation9], 4096  }
  0x1f   :  { %722 = vsyncadd [#allocation9], 4294963200 }
  0x20   :  { %723 = dma.done.wait [#allocation12], 4096  }
  0x21   :  { %724 = vsyncadd [#allocation12], 4294963200 }
  0x22   :  { %725 = dma.done.wait [#allocation15], 2048  }
  0x23   :  { %726 = vsyncadd [#allocation15], 4294965248  ;;  %v190_v0 = vld [vmem:[#allocation5 + $0x78] sm:$0xff]  ;;  %v189_v1 = vld [vmem:[#allocation5 + $0x70] sm:$0xff]  ;;  %s739_s29 = smov [#allocation16]   ;;  %s469_s5 = sshll.u32 %s904_s15, 4  ;;  %s470_s5 = int_to_ptr.hbm [resolvable:$true] %s469_s5 }
  0x24   :  { %195 = vmatpush.msra.mxu0 %v190_v0  ;;  %v188_v2 = vld [vmem:[#allocation5 + $0x68] sm:$0xff]  ;;  %v187_v3 = vld [vmem:[#allocation5 + $0x60] sm:$0xff]  ;;  %v231_v4 = vld [vmem:[#allocation7 + $0x78] sm:$0xff]  ;;  %s467_s30 = sshll.u32 %s739_s29, 4  ;;  %s468_s30 = int_to_ptr.vmem [resolvable:$true] %s467_s30 }
  0x25   :  { %v186_v5 = vld [vmem:[#allocation5 + $0x58] sm:$0xff]  ;;  %236 = vmatpush.msra.mxu1 %v231_v4  ;;  %v230_v6 = vld [vmem:[#allocation7 + $0x70] sm:$0xff]  ;;  %v229_v7 = vld [vmem:[#allocation7 + $0x68] sm:$0xff] }
  0x26   :  { %196 = vmatpush.msra.mxu0 %v189_v1  ;;  %v185_v8 = vld [vmem:[#allocation5 + $0x50] sm:$0xff]  ;;  %v184_v9 = vld [vmem:[#allocation5 + $0x48] sm:$0xff]  ;;  %v228_v10 = vld [vmem:[#allocation7 + $0x60] sm:$0xff] }
  0x27   :  { %237 = vmatpush.msra.mxu1 %v230_v6  ;;  %v227_v11 = vld [vmem:[#allocation7 + $0x58] sm:$0xff]  ;;  %v183_v12 = vld [vmem:[#allocation5 + $0x40] sm:$0xff]  ;;  %v226_v13 = vld [vmem:[#allocation7 + $0x50] sm:$0xff] }
  0x28   :  { %197 = vmatpush.msra.mxu0 %v188_v2  ;;  %v182_v14 = vld [vmem:[#allocation5 + $0x38] sm:$0xff]  ;;  %v225_v15 = vld [vmem:[#allocation7 + $0x48] sm:$0xff]  ;;  %v181_v16 = vld [vmem:[#allocation5 + $0x30] sm:$0xff] }
  0x29   :  { %238 = vmatpush.msra.mxu1 %v229_v7  ;;  %v224_v17 = vld [vmem:[#allocation7 + $0x40] sm:$0xff]  ;;  %v180_v18 = vld [vmem:[#allocation5 + $0x28] sm:$0xff]  ;;  %v223_v19 = vld [vmem:[#allocation7 + $0x38] sm:$0xff] }
  0x2a   :  { %198 = vmatpush.msra.mxu0 %v187_v3  ;;  %v179_v20 = vld [vmem:[#allocation5 + $0x20] sm:$0xff]  ;;  %v222_v21 = vld [vmem:[#allocation7 + $0x30] sm:$0xff]  ;;  %v178_v22 = vld [vmem:[#allocation5 + $0x18] sm:$0xff] }
  0x2b   :  { %239 = vmatpush.msra.mxu1 %v228_v10  ;;  %v221_v23 = vld [vmem:[#allocation7 + $0x28] sm:$0xff]  ;;  %v177_v24 = vld [vmem:[#allocation5 + $0x10] sm:$0xff]  ;;  %v220_v25 = vld [vmem:[#allocation7 + $0x20] sm:$0xff] }
  0x2c   :  { %199 = vmatpush.msra.mxu0 %v186_v5  ;;  %v176_v26 = vld [vmem:[#allocation5 + $0x8] sm:$0xff]  ;;  %v219_v27 = vld [vmem:[#allocation7 + $0x18] sm:$0xff]  ;;  %v175_v28 = vld [vmem:[#allocation5] sm:$0xff] }
  0x2d   :  { %240 = vmatpush.msra.mxu1 %v227_v11  ;;  %v174_v29 = vld [vmem:[#allocation2] sm:$0xff]  ;;  %v218_v30 = vld [vmem:[#allocation7 + $0x10] sm:$0xff]  ;;  %v217_v31 = vld [vmem:[#allocation7 + $0x8] sm:$0xff] }
  0x2e   :  { %200 = vmatpush.msra.mxu0 %v185_v8  ;;  %v216_v32 = vld [vmem:[#allocation7] sm:$0xff]  ;;  %v272_v33 = vld [vmem:[#allocation8 + $0x78] sm:$0xff]  ;;  %v271_v34 = vld [vmem:[#allocation8 + $0x70] sm:$0xff] }
  0x2f   :  { %241 = vmatpush.msra.mxu1 %v226_v13  ;;  %277 = vmatpush.msra.mxu2 %v272_v33  ;;  %v270_v35 = vld [vmem:[#allocation8 + $0x68] sm:$0xff]  ;;  %v269_v36 = vld [vmem:[#allocation8 + $0x60] sm:$0xff]  ;;  %v268_v37 = vld [vmem:[#allocation8 + $0x58] sm:$0xff] }
  0x30   :  { %201 = vmatpush.msra.mxu0 %v184_v9  ;;  %v267_v38 = vld [vmem:[#allocation8 + $0x50] sm:$0xff]  ;;  %v266_v39 = vld [vmem:[#allocation8 + $0x48] sm:$0xff]  ;;  %v265_v40 = vld [vmem:[#allocation8 + $0x40] sm:$0xff] }
  0x31   :  { %242 = vmatpush.msra.mxu1 %v225_v15  ;;  %278 = vmatpush.msra.mxu2 %v271_v34  ;;  %v264_v41 = vld [vmem:[#allocation8 + $0x38] sm:$0xff]  ;;  %v263_v42 = vld [vmem:[#allocation8 + $0x30] sm:$0xff]  ;;  %v262_v43 = vld [vmem:[#allocation8 + $0x28] sm:$0xff] }
  0x32   :  { %202 = vmatpush.msra.mxu0 %v183_v12  ;;  %v261_v44 = vld [vmem:[#allocation8 + $0x20] sm:$0xff]  ;;  %v260_v45 = vld [vmem:[#allocation8 + $0x18] sm:$0xff]  ;;  %v259_v50 = vld [vmem:[#allocation8 + $0x10] sm:$0xff] }
  0x33   :  { %243 = vmatpush.msra.mxu1 %v224_v17  ;;  %279 = vmatpush.msra.mxu2 %v270_v35  ;;  %v494_v46 = vld [vmem:[%s891_s2] ss:$0 sm:$0xff]  ;;  %v258_v51 = vld [vmem:[#allocation8 + $0x8] sm:$0xff]  ;;  %v257_v52 = vld [vmem:[#allocation8] sm:$0xff] }
  0x34   :  { %203 = vmatpush.msra.mxu0 %v182_v14  ;;  %v313_v53 = vld [vmem:[#allocation10 + $0x78] sm:$0xff]  ;;  %v312_v54 = vld [vmem:[#allocation10 + $0x70] sm:$0xff]  ;;  %v311_v55 = vld [vmem:[#allocation10 + $0x68] sm:$0xff] }
  0x35   :  { %244 = vmatpush.msra.mxu1 %v223_v19  ;;  %280 = vmatpush.msra.mxu2 %v269_v36  ;;  %v310_v56 = vld [vmem:[#allocation10 + $0x60] sm:$0xff]  ;;  %v309_v57 = vld [vmem:[#allocation10 + $0x58] sm:$0xff]  ;;  %v308_v58 = vld [vmem:[#allocation10 + $0x50] sm:$0xff] }
  0x36   :  { %204 = vmatpush.msra.mxu0 %v181_v16  ;;  %318 = vmatpush.msra.mxu3 %v313_v53  ;;  %v307_v59 = vld [vmem:[#allocation10 + $0x48] sm:$0xff]  ;;  %v306_v60 = vld [vmem:[#allocation10 + $0x40] sm:$0xff]  ;;  %v305_v61 = vld [vmem:[#allocation10 + $0x38] sm:$0xff] }
  0x37   :  { %245 = vmatpush.msra.mxu1 %v222_v21  ;;  %281 = vmatpush.msra.mxu2 %v268_v37  ;;  %v304_v62 = vld [vmem:[#allocation10 + $0x30] sm:$0xff]  ;;  %v303_v63 = vld [vmem:[#allocation10 + $0x28] sm:$0xff]  ;;  %v302_v0 = vld [vmem:[#allocation10 + $0x20] sm:$0xff] }
  0x38   :  { %205 = vmatpush.msra.mxu0 %v180_v18  ;;  %319 = vmatpush.msra.mxu3 %v312_v54  ;;  %v301_v1 = vld [vmem:[#allocation10 + $0x18] sm:$0xff]  ;;  %v300_v6 = vld [vmem:[#allocation10 + $0x10] sm:$0xff]  ;;  %v299_v7 = vld [vmem:[#allocation10 + $0x8] sm:$0xff] }
  0x39   :  { %246 = vmatpush.msra.mxu1 %v221_v23  ;;  %282 = vmatpush.msra.mxu2 %v267_v38  ;;  %v495_v2 = vld [vmem:[%s893_s4] ss:$0 sm:$0xff]  ;;  %v298_v8 = vld [vmem:[#allocation10] sm:$0xff]  ;;  %v353_v10 = vld [vmem:[#allocation11 + $0x70] sm:$0xff] }
  0x3a   :  { %206 = vmatpush.msra.mxu0 %v179_v20  ;;  %320 = vmatpush.msra.mxu3 %v311_v55  ;;  %v354_v9 = vld [vmem:[#allocation11 + $0x78] sm:$0xff]  ;;  %v352_v11 = vld [vmem:[#allocation11 + $0x68] sm:$0xff]  ;;  %v351_v12 = vld [vmem:[#allocation11 + $0x60] sm:$0xff] }
  0x3b   :  { %247 = vmatpush.msra.mxu1 %v220_v25  ;;  %283 = vmatpush.msra.mxu2 %v266_v39  ;;  %v350_v13 = vld [vmem:[#allocation11 + $0x58] sm:$0xff]  ;;  %v349_v14 = vld [vmem:[#allocation11 + $0x50] sm:$0xff]  ;;  %v348_v15 = vld [vmem:[#allocation11 + $0x48] sm:$0xff] }
  0x3c   :  { %207 = vmatpush.msra.mxu0 %v178_v22  ;;  %321 = vmatpush.msra.mxu3 %v310_v56  ;;  %v347_v16 = vld [vmem:[#allocation11 + $0x40] sm:$0xff]  ;;  %v346_v17 = vld [vmem:[#allocation11 + $0x38] sm:$0xff]  ;;  %v345_v18 = vld [vmem:[#allocation11 + $0x30] sm:$0xff] }
  0x3d   :  { %248 = vmatpush.msra.mxu1 %v219_v27  ;;  %284 = vmatpush.msra.mxu2 %v265_v40  ;;  %v344_v19 = vld [vmem:[#allocation11 + $0x28] sm:$0xff]  ;;  %v343_v20 = vld [vmem:[#allocation11 + $0x20] sm:$0xff]  ;;  %v342_v21 = vld [vmem:[#allocation11 + $0x18] sm:$0xff] }
  0x3e   :  { %208 = vmatpush.msra.mxu0 %v177_v24  ;;  %322 = vmatpush.msra.mxu3 %v309_v57  ;;  %v496_v22 = vld [vmem:[%s895_s6] ss:$0 sm:$0xff]  ;;  %v340_v27 = vld [vmem:[#allocation11 + $0x8] sm:$0xff]  ;;  %v390_v34 = vld [vmem:[#allocation13 + $0x50] sm:$0xff] }
  0x3f   :  { %249 = vmatpush.msra.mxu1 %v218_v30  ;;  %285 = vmatpush.msra.mxu2 %v264_v41  ;;  %v394_v30 = vld [vmem:[#allocation13 + $0x70] sm:$0xff]  ;;  %v391_v33 = vld [vmem:[#allocation13 + $0x58] sm:$0xff]  ;;  %v389_v35 = vld [vmem:[#allocation13 + $0x48] sm:$0xff] }
  0x40   :  { %209 = vmatpush.msra.mxu0 %v176_v26  ;;  %323 = vmatpush.msra.mxu3 %v308_v58  ;;  %v341_v26 = vld [vmem:[#allocation11 + $0x10] sm:$0xff]  ;;  %v388_v36 = vld [vmem:[#allocation13 + $0x40] sm:$0xff]  ;;  %v387_v37 = vld [vmem:[#allocation13 + $0x38] sm:$0xff] }
  0x41   :  { %250 = vmatpush.msra.mxu1 %v217_v31  ;;  %286 = vmatpush.msra.mxu2 %v263_v42  ;;  %v393_v31 = vld [vmem:[#allocation13 + $0x68] sm:$0xff]  ;;  %v386_v38 = vld [vmem:[#allocation13 + $0x30] sm:$0xff]  ;;  %v384_v40 = vld [vmem:[#allocation13 + $0x20] sm:$0xff] }
  0x42   :  { %210 = vmatpush.msra.mxu0 %v175_v28  ;;  %324 = vmatpush.msra.mxu3 %v307_v59  ;;  %v339_v28 = vld [vmem:[#allocation11] sm:$0xff]  ;;  %v385_v39 = vld [vmem:[#allocation13 + $0x28] sm:$0xff]  ;;  %v383_v41 = vld [vmem:[#allocation13 + $0x18] sm:$0xff] }
  0x43   :  { %211 = vmatmul.f32.vlgmr.msra.gmra.mxu0 %v174_v29  ;;  %251 = vmatpush.msra.mxu1 %v216_v32  ;;  %v395_v29 = vld [vmem:[#allocation13 + $0x78] sm:$0xff]  ;;  %v392_v32 = vld [vmem:[#allocation13 + $0x60] sm:$0xff]  ;;  %v431_v54 = vld [vmem:[#allocation14 + $0x50] sm:$0xff] }
  0x44   :  { %287 = vmatpush.msra.mxu2 %v262_v43  ;;  %325 = vmatpush.msra.mxu3 %v306_v60  ;;  %v497_v42 = vld [vmem:[%s897_s8] ss:$0 sm:$0xff]  ;;  %v430_v55 = vld [vmem:[#allocation14 + $0x48] sm:$0xff]  ;;  %v429_v56 = vld [vmem:[#allocation14 + $0x40] sm:$0xff] }
  0x45   :  { %359 = vmatpush.msrb.mxu0 %v354_v9  ;;  %400 = vmatpush.msrb.mxu1 %v395_v29  ;;  %v432_v53 = vld [vmem:[#allocation14 + $0x58] sm:$0xff]  ;;  %v427_v58 = vld [vmem:[#allocation14 + $0x30] sm:$0xff]  ;;  %v426_v59 = vld [vmem:[#allocation14 + $0x28] sm:$0xff] }
  0x46   :  { %288 = vmatpush.msra.mxu2 %v261_v44  ;;  %326 = vmatpush.msra.mxu3 %v305_v61  ;;  %v428_v57 = vld [vmem:[#allocation14 + $0x38] sm:$0xff]  ;;  %v425_v60 = vld [vmem:[#allocation14 + $0x20] sm:$0xff] }
  0x47   :  { %360 = vmatpush.msrb.mxu0 %v353_v10  ;;  %401 = vmatpush.msrb.mxu1 %v394_v30  ;;  %v424_v61 = vld [vmem:[#allocation14 + $0x18] sm:$0xff] }
  0x48   :  { %289 = vmatpush.msra.mxu2 %v260_v45  ;;  %327 = vmatpush.msra.mxu3 %v304_v62  ;;  %v498_v62 = vld [vmem:[%s899_s10] ss:$0 sm:$0xff] }
  0x49   :  { %361 = vmatpush.msrb.mxu0 %v352_v11  ;;  %402 = vmatpush.msrb.mxu1 %v393_v31  ;;  %v500_v9 = vld [vmem:[%s903_s14] ss:$0 sm:$0xff] }
  0x4a   :  { %290 = vmatpush.msra.mxu2 %v259_v50  ;;  %328 = vmatpush.msra.mxu3 %v303_v63  ;;  %v435_v50 = vld [vmem:[#allocation14 + $0x70] sm:$0xff] }
  0x4b   :  { %362 = vmatpush.msrb.mxu0 %v351_v12  ;;  %403 = vmatpush.msrb.mxu1 %v392_v32 }
  0x4c   :  { %291 = vmatpush.msra.mxu2 %v258_v51  ;;  %329 = vmatpush.msra.mxu3 %v302_v0  ;;  %v434_v51 = vld [vmem:[#allocation14 + $0x68] sm:$0xff] }
  0x4d   :  { %363 = vmatpush.msrb.mxu0 %v350_v13  ;;  %404 = vmatpush.msrb.mxu1 %v391_v33 }
  0x4e   :  { %292 = vmatpush.msra.mxu2 %v257_v52  ;;  %330 = vmatpush.msra.mxu3 %v301_v1  ;;  %v433_v52 = vld [vmem:[#allocation14 + $0x60] sm:$0xff] }
  0x4f   :  { %364 = vmatpush.msrb.mxu0 %v349_v14  ;;  %405 = vmatpush.msrb.mxu1 %v390_v34 }
  0x50   :  { %331 = vmatpush.msra.mxu3 %v300_v6 }
  0x51   :  { %365 = vmatpush.msrb.mxu0 %v348_v15  ;;  %406 = vmatpush.msrb.mxu1 %v389_v35 }
  0x52   :  { %332 = vmatpush.msra.mxu3 %v299_v7 }
  0x53   :  { %366 = vmatpush.msrb.mxu0 %v347_v16  ;;  %407 = vmatpush.msrb.mxu1 %v388_v36 }
  0x54   :  { %333 = vmatpush.msra.mxu3 %v298_v8 }
  0x55   :  { %367 = vmatpush.msrb.mxu0 %v346_v17  ;;  %408 = vmatpush.msrb.mxu1 %v387_v37 }
  0x57   :  { %368 = vmatpush.msrb.mxu0 %v345_v18  ;;  %409 = vmatpush.msrb.mxu1 %v386_v38 }
  0x59   :  { %369 = vmatpush.msrb.mxu0 %v344_v19  ;;  %410 = vmatpush.msrb.mxu1 %v385_v39 }
  0x5b   :  { %370 = vmatpush.msrb.mxu0 %v343_v20  ;;  %411 = vmatpush.msrb.mxu1 %v384_v40 }
  0x5d   :  { %371 = vmatpush.msrb.mxu0 %v342_v21  ;;  %412 = vmatpush.msrb.mxu1 %v383_v41 }
  0x5f   :  { %372 = vmatpush.msrb.mxu0 %v341_v26 }
  0x61   :  { %373 = vmatpush.msrb.mxu0 %v340_v27 }
  0x63   :  { %374 = vmatpush.msrb.mxu0 %v339_v28 }
  0xc0   :  { %v212_v47 = vpop.f32.mrf.mxu0 }
  0xc1   :  { %v213_v48 = vadd.f32 %v494_v46, %v212_v47  ;;  %v382_v46 = vld [vmem:[#allocation13 + $0x10] sm:$0xff]  ;;  %v381_v47 = vld [vmem:[#allocation13 + $0x8] sm:$0xff] }
  0xc2   :  { %413 = vmatpush.msrb.mxu1 %v382_v46 }
  0xc3   :  { %v215_v49 = vmax.f32 %v213_v48, 0.0  ;;  %v380_v48 = vld [vmem:[#allocation13] sm:$0xff] }
  0xc4   :  { %414 = vmatpush.msrb.mxu1 %v381_v47 }
  0xc5   :  { %252 = vmatmul.f32.vlgmr.msra.gmra.mxu1 %v215_v49  ;;  %v436_v49 = vld [vmem:[#allocation14 + $0x78] sm:$0xff] }
  0xc6   :  { %415 = vmatpush.msrb.mxu1 %v380_v48  ;;  %441 = vmatpush.msrb.mxu2 %v436_v49 }
  0xc8   :  { %442 = vmatpush.msrb.mxu2 %v435_v50 }
  0xca   :  { %443 = vmatpush.msrb.mxu2 %v434_v51 }
  0xcc   :  { %444 = vmatpush.msrb.mxu2 %v433_v52 }
  0xce   :  { %445 = vmatpush.msrb.mxu2 %v432_v53 }
  0xd0   :  { %446 = vmatpush.msrb.mxu2 %v431_v54 }
  0xd2   :  { %447 = vmatpush.msrb.mxu2 %v430_v55 }
  0xd4   :  { %448 = vmatpush.msrb.mxu2 %v429_v56 }
  0xd6   :  { %449 = vmatpush.msrb.mxu2 %v428_v57 }
  0xd8   :  { %450 = vmatpush.msrb.mxu2 %v427_v58 }
  0xda   :  { %451 = vmatpush.msrb.mxu2 %v426_v59 }
  0xdc   :  { %452 = vmatpush.msrb.mxu2 %v425_v60 }
  0xde   :  { %453 = vmatpush.msrb.mxu2 %v424_v61 }
 0x142   :  { %v253_v3 = vpop.f32.mrf.mxu1 }
 0x143   :  { %v254_v4 = vadd.f32 %v495_v2, %v253_v3  ;;  %v423_v2 = vld [vmem:[#allocation14 + $0x10] sm:$0xff]  ;;  %v422_v3 = vld [vmem:[#allocation14 + $0x8] sm:$0xff] }
 0x144   :  { %454 = vmatpush.msrb.mxu2 %v423_v2 }
 0x145   :  { %v256_v5 = vmax.f32 %v254_v4, 0.0  ;;  %v421_v4 = vld [vmem:[#allocation14] sm:$0xff] }
 0x146   :  { %455 = vmatpush.msrb.mxu2 %v422_v3 }
 0x147   :  { %293 = vmatmul.f32.vlgmr.msra.gmra.mxu2 %v256_v5  ;;  %v499_v5 = vld [vmem:[%s901_s12] ss:$0 sm:$0xff] }
 0x148   :  { %456 = vmatpush.msrb.mxu2 %v421_v4 }
 0x1ca   :  { %v294_v23 = vpop.f32.mrf.mxu2 }
 0x1cb   :  { %v295_v24 = vadd.f32 %v496_v22, %v294_v23 }
 0x1cd   :  { %v297_v25 = vmax.f32 %v295_v24, 0.0 }
 0x1cf   :  { %334 = vmatmul.f32.vlgmr.msra.gmra.mxu3 %v297_v25 }
 0x252   :  { %v335_v43 = vpop.f32.mrf.mxu3 }
 0x253   :  { %v336_v44 = vadd.f32 %v497_v42, %v335_v43 }
 0x255   :  { %v338_v45 = vmax.f32 %v336_v44, 0.0 }
 0x257   :  { %375 = vmatmul.f32.vlgmr.msrb.gmra.mxu0 %v338_v45 }
 0x2d4   :  { %v376_v63 = vpop.f32.mrf.mxu0 }
 0x2d5   :  { %v377_v0 = vadd.f32 %v498_v62, %v376_v63 }
 0x2d7   :  { %v379_v1 = vmax.f32 %v377_v0, 0.0 }
 0x2d9   :  { %416 = vmatmul.f32.vlgmr.msrb.gmra.mxu1 %v379_v1 }
 0x356   :  { %v417_v6 = vpop.f32.mrf.mxu1 }
 0x357   :  { %v418_v7 = vadd.f32 %v499_v5, %v417_v6 }
 0x359   :  { %v420_v8 = vmax.f32 %v418_v7, 0.0 }
 0x35b   :  { %457 = vmatmul.f32.vlgmr.msrb.gmra.mxu2 %v420_v8 }
 0x3de   :  { %v458_v10 = vpop.f32.mrf.mxu2 }
 0x3df   :  { %v459_v11 = vadd.f32 %v500_v9, %v458_v10 }
 0x3e1   :  { %461 = vst [vmem:[#allocation16] sm:$0xff] %v459_v11 }
 0x3e2   :  { %472 = dma.vmem_to_hbm [thread:$0]  %s468_s30, 128, %s470_s5, [#allocation4]  }
 0x3e3   :  { %727 = dma.done.wait [#allocation4], 128  }
 0x3e4   :  { %728 = vsyncadd [#allocation4], 4294967168 }
 0x3e5   :  { %477 = vsyncpa [#allocation3], 1 }
 0x3e6   :  { %478 = vsyncpa [#allocation6], 1 }
 0x3e7   :  { %479 = vsyncpa [#allocation9], 1 }
 0x3e8   :  { %480 = vsyncpa [#allocation12], 1 }
 0x3e9   :  { %481 = vsyncpa [#allocation15], 1 }
 0x3ea   :  { %482 = vsyncpa [#allocation4], 1 }

</bundles_post_ra>
